<compile_context>
chip_gen: v6e
topology: v6e:2x2x1
jax: 0.10.0
libtpu: 0.0.40
codegen_flags: <defaults>
</compile_context>

<pallas_src>
import functools

import jax
import jax.numpy as jnp
from jax import lax
from jax.experimental import pallas as pl
from jax.experimental.pallas import tpu as pltpu

_MIB = 1024 * 1024
_LANES = 128
_SUBLANES = 8
# Classes-on-sublanes (transposed) layout pays off while C is small enough
# that a rows-on-sublanes block would leave most of each vreg idle.
_TRANSPOSE_MAX_C = 128


def _round_up(x, m):
    return ((x + m - 1) // m) * m


def _tpu_config():
    """(num_splits, vmem_limit_bytes, data_budget_bytes) per TPU generation."""
    kind = ""
    try:
        kind = jax.devices()[0].device_kind.lower()
    except Exception:
        pass
    if ("v7" in kind) or ("tpu7" in kind):
        # v7x: 2 TensorCores/chip, 64 MiB VMEM per core -> stay well under.
        # (If the plain "parallel" tag does not shard across cores, switch the
        #  first grid axis to pltpu.CORE_PARALLEL.)
        return 2, 40 * _MIB, 20 * _MIB
    # v5e / v6e: single TensorCore, 128 MiB VMEM -> larger tiles are fine.
    return 1, 64 * _MIB, 32 * _MIB


def _focal_weight(q, gamma):
    # gamma is a trace-time Python constant; gamma==2 must be one VPU multiply
    # (a float exponent would lower to exp(gamma*log(q)) on the single EUP).
    if gamma == 2:
        return q * q
    if float(gamma) == int(gamma):
        return q ** int(gamma)
    return q ** gamma


def _focal_kernel_cols(preds_ref, labels_ref, o_ref, acc_ref, *,
                       gamma, n_total, tile_n, steps):
    """Small-C layout: preds block (C, TN), labels block (1, TN)."""
    c = pl.program_id(0)   # parallel split (one per TensorCore on v7x)
    t = pl.program_id(1)   # reduction steps within a split

    @pl.when(t == 0)
    def _():
        acc_ref[...] = jnp.zeros_like(acc_ref)

    x = preds_ref[...].astype(jnp.float32)                          # (C, TN)
    m = jnp.max(x, axis=0, keepdims=True)                           # (1, TN)
    shifted = x - m
    lse = jnp.log(jnp.sum(jnp.exp(shifted), axis=0, keepdims=True))  # (1, TN)

    lbl = labels_ref[...]                                            # (1, TN)
    cls = lax.broadcasted_iota(jnp.int32, shifted.shape, 0)          # (C, TN)
    tgt = jnp.sum(jnp.where(cls == lbl, shifted, 0.0), axis=0, keepdims=True)
    logp = tgt - lse                                                 # (1, TN)
    p = jnp.exp(logp)
    loss = -_focal_weight(1.0 - p, gamma) * logp                     # (1, TN)

    row0 = (c * steps + t) * tile_n
    has_pad = row0 + tile_n > n_total

    @pl.when(jnp.logical_not(has_pad))
    def _():
        acc_ref[...] += loss

    @pl.when(has_pad)  # only the (at most) tail steps pay for the mask
    def _():
        rows = row0 + lax.broadcasted_iota(jnp.int32, loss.shape, 1)
        acc_ref[...] += jnp.where(rows < n_total, loss, 0.0)

    @pl.when(t == steps - 1)
    def _():
        o_ref[...] = jnp.broadcast_to(jnp.sum(acc_ref[...]), o_ref.shape)


def _focal_kernel_rows(preds_ref, labels_ref, o_ref, acc_ref, *,
                       gamma, n_total, tile_n, steps):
    """Large-C layout: preds block (TN, C), labels block (TN, 1)."""
    c = pl.program_id(0)
    t = pl.program_id(1)

    @pl.when(t == 0)
    def _():
        acc_ref[...] = jnp.zeros_like(acc_ref)

    x = preds_ref[...].astype(jnp.float32)                           # (TN, C)
    m = jnp.max(x, axis=1, keepdims=True)
    shifted = x - m
    lse = jnp.log(jnp.sum(jnp.exp(shifted), axis=1, keepdims=True))  # (TN, 1)

    lbl = labels_ref[...]                                            # (TN, 1)
    cls = lax.broadcasted_iota(jnp.int32, shifted.shape, 1)          # (TN, C)
    tgt = jnp.sum(jnp.where(cls == lbl, shifted, 0.0), axis=1, keepdims=True)
    logp = tgt - lse                                                 # (TN, 1)
    p = jnp.exp(logp)
    loss = -_focal_weight(1.0 - p, gamma) * logp                     # (TN, 1)

    row0 = (c * steps + t) * tile_n
    has_pad = row0 + tile_n > n_total

    @pl.when(jnp.logical_not(has_pad))
    def _():
        acc_ref[...] += loss

    @pl.when(has_pad)
    def _():
        rows = row0 + lax.broadcasted_iota(jnp.int32, loss.shape, 0)
        acc_ref[...] += jnp.where(rows < n_total, loss, 0.0)

    @pl.when(t == steps - 1)
    def _():
        o_ref[...] = jnp.broadcast_to(jnp.sum(acc_ref[...]), o_ref.shape)


def focal_loss(preds, labels, *, gamma=2, size_average=True,
               num_splits=None, vmem_limit_bytes=None, data_budget_bytes=None):
    """preds: (..., C) float; labels: (...) int — matches PyTorch semantics."""
    C = preds.shape[-1]
    preds2d = preds.reshape(-1, C)                   # keep input dtype (bf16 ok)
    labels1d = labels.reshape(-1).astype(jnp.int32)
    N = preds2d.shape[0]

    dflt_splits, dflt_limit, dflt_budget = _tpu_config()
    if num_splits is None:
        num_splits = dflt_splits
    if vmem_limit_bytes is None:
        vmem_limit_bytes = dflt_limit
    if data_budget_bytes is None:
        data_budget_bytes = dflt_budget

    itemsize = jnp.dtype(preds2d.dtype).itemsize
    transposed = C <= _TRANSPOSE_MAX_C

    if transposed:
        lane_align = _LANES                 # data rows live on lanes
        c_pad = _round_up(C, _SUBLANES)
        # VMEM bytes per data row: double-buffered preds + (sublane-padded)
        # labels blocks, ~3 f32 (C, TN) temporaries, (1, TN) f32 accumulator.
        per_row = (2 * c_pad * itemsize + 2 * _SUBLANES * 4
                   + 3 * c_pad * 4 + _SUBLANES * 4)
        hard_cap = 32768
    else:
        lane_align = _SUBLANES              # data rows live on sublanes
        c_pad = _round_up(C, _LANES)
        # Double-buffered preds + (lane-padded) labels, ~3 f32 temporaries,
        # lane-padded (TN, 1) accumulator.
        per_row = (2 * c_pad * itemsize + 2 * _LANES * 4
                   + 3 * c_pad * 4 + _LANES * 4)
        hard_cap = 8192

    tile_n = data_budget_bytes // per_row
    if tile_n < lane_align:
        # TODO(synk): very large class counts need a class-axis (online
        # logsumexp) tiling path; the minimum row block does not fit VMEM.
        raise ValueError(
            f"focal_loss: C={C} too large for the single-pass kernel "
            f"(min block needs {per_row * lane_align} bytes, "
            f"budget {data_budget_bytes}).")
    rows_per_split = _round_up(pl.cdiv(N, num_splits), lane_align)
    tile_n = min(tile_n, hard_cap, rows_per_split)
    tile_n = max((tile_n // lane_align) * lane_align, lane_align)

    steps = pl.cdiv(N, num_splits * tile_n)
    n_pad = num_splits * tile_n * steps

    if transposed:
        preds_in = preds2d.T                          # (C, N): rows -> lanes
        labels_in = labels1d.reshape(1, -1)           # (1, N): dense DMA
        if n_pad != N:
            preds_in = jnp.pad(preds_in, ((0, 0), (0, n_pad - N)))
            labels_in = jnp.pad(labels_in, ((0, 0), (0, n_pad - N)))
        kernel = functools.partial(_focal_kernel_cols, gamma=gamma,
                                   n_total=N, tile_n=tile_n, steps=steps)
        in_specs = [
            pl.BlockSpec((C, tile_n), lambda c, t: (0, c * steps + t)),
            pl.BlockSpec((1, tile_n), lambda c, t: (0, c * steps + t)),
        ]
        acc_shape = (1, tile_n)
    else:
        preds_in = preds2d                            # (N, C)
        labels_in = labels1d.reshape(-1, 1)           # (N, 1)
        if n_pad != N:
            preds_in = jnp.pad(preds_in, ((0, n_pad - N), (0, 0)))
            labels_in = jnp.pad(labels_in, ((0, n_pad - N), (0, 0)))
        kernel = functools.partial(_focal_kernel_rows, gamma=gamma,
                                   n_total=N, tile_n=tile_n, steps=steps)
        in_specs = [
            pl.BlockSpec((tile_n, C), lambda c, t: (c * steps + t, 0)),
            pl.BlockSpec((tile_n, 1), lambda c, t: (c * steps + t, 0)),
        ]
        acc_shape = (tile_n, 1)

    out = pl.pallas_call(
        kernel,
        out_shape=jax.ShapeDtypeStruct((num_splits, 8, 128), jnp.float32),
        grid_spec=pltpu.PrefetchScalarGridSpec(
            num_scalar_prefetch=0,
            grid=(num_splits, steps),
            in_specs=in_specs,
            out_specs=pl.BlockSpec((1, 8, 128), lambda c, t: (c, 0, 0)),
            scratch_shapes=[pltpu.VMEM(acc_shape, jnp.float32)],
        ),
        compiler_params=pltpu.CompilerParams(
            dimension_semantics=("parallel", "arbitrary"),
            vmem_limit_bytes=vmem_limit_bytes,
        ),
    )(preds_in, labels_in)

    total = jnp.sum(out[:, 0, 0])
    if size_average:
        return total / jnp.float32(N)
    return total


def _focal_loss_ref(preds, labels, gamma=2, size_average=True):
    C = preds.shape[-1]
    p2 = preds.reshape(-1, C).astype(jnp.float32)
    l2 = labels.reshape(-1)
    logsoft = jax.nn.log_softmax(p2, axis=1)
    logp = jnp.take_along_axis(logsoft, l2[:, None], axis=1)
    p = jnp.exp(logp)
    loss = -((1.0 - p) ** gamma) * logp
    return loss.mean() if size_average else loss.sum()


if __name__ == "__main__":
    key = jax.random.PRNGKey(0)
    kp, kl = jax.random.split(key)

    # Small-C path (classes on sublanes): (batch=2, seq=8, classes=16).
    preds = jax.random.normal(kp, (2, 8, 16), dtype=jnp.float32)
    labels = jax.random.randint(kl, (2, 8), 0, 16, dtype=jnp.int32)
    out = jax.block_until_ready(focal_loss(preds, labels, gamma=2,
                                           size_average=True))
    ref = _focal_loss_ref(preds, labels, gamma=2, size_average=True)
    assert jnp.allclose(out, ref, atol=1e-5, rtol=1e-5), (out, ref)

    # Ragged N + sum reduction (exercises the masked-tail branch).
    preds_r = jax.random.normal(kp, (3, 7, 16), dtype=jnp.float32)
    labels_r = jax.random.randint(kl, (3, 7), 0, 16, dtype=jnp.int32)
    out_r = jax.block_until_ready(
        focal_loss(preds_r, labels_r, gamma=2, size_average=False))
    ref_r = _focal_loss_ref(preds_r, labels_r, gamma=2, size_average=False)
    assert jnp.allclose(out_r, ref_r, atol=1e-5, rtol=1e-5), (out_r, ref_r)

    # Large-C path (classes on lanes): C=200 > transpose threshold.
    preds_c = jax.random.normal(kp, (2, 13, 200), dtype=jnp.float32)
    labels_c = jax.random.randint(kl, (2, 13), 0, 200, dtype=jnp.int32)
    out_c = jax.block_until_ready(focal_loss(preds_c, labels_c))
    ref_c = _focal_loss_ref(preds_c, labels_c)
    assert jnp.allclose(out_c, ref_c, atol=1e-5, rtol=1e-5), (out_c, ref_c)

    print("KERNEL_OK")
</pallas_src>

<mosaic_0001>
module attributes {stable_mosaic.version = 11 : i64} {
  func.func @_focal_kernel_cols(%arg0: i32, %arg1: i32, %arg2: memref<16x128xf32, #tpu.memory_space<vmem>>, %arg3: memref<1x128xi32, #tpu.memory_space<vmem>>, %arg4: memref<1x8x128xf32, #tpu.memory_space<vmem>>, %arg5: memref<1x128xf32, #tpu.memory_space<vmem>>) attributes {dimension_semantics = [#tpu.dimension_semantics<parallel>, #tpu.dimension_semantics<arbitrary>], iteration_bounds = array<i64: 1, 1>, scalar_prefetch = 0 : i64, scratch_operands = 1 : i64, tpu.core_type = #tpu.core_type<tc>, window_params = [{transform_indices = @transform_0, window_bounds = array<i64: 16, 128>}, {transform_indices = @transform_1, window_bounds = array<i64: 1, 128>}, {transform_indices = @transform_2, window_bounds = array<i64: 1, 8, 128>}]} {
    %c0_i32 = arith.constant 0 : i32
    %0 = arith.cmpi eq, %arg1, %c0_i32 : i32
    %1 = arith.extui %0 : i1 to i32
    %c0_i32_0 = arith.constant 0 : i32
    %2 = arith.cmpi ne, %1, %c0_i32_0 : i32
    scf.if %2 {
      %cst_14 = arith.constant 0.000000e+00 : f32
      %41 = vector.broadcast %cst_14 : f32 to vector<1x128xf32>
      %c0_15 = arith.constant 0 : index
      %c0_16 = arith.constant 0 : index
      %42 = vector.load %arg5[%c0_15, %c0_16] : memref<1x128xf32, #tpu.memory_space<vmem>>, vector<1x128xf32>
      tpu.vector_store %arg5[%c0_15, %c0_16], %41 {strides = array<i32>} : memref<1x128xf32, #tpu.memory_space<vmem>>, vector<1x128xf32>,
    } else {
    }
    %c0 = arith.constant 0 : index
    %c0_1 = arith.constant 0 : index
    %3 = vector.load %arg2[%c0, %c0_1] : memref<16x128xf32, #tpu.memory_space<vmem>>, vector<16x128xf32>
    %cst = arith.constant dense<0xFF800000> : vector<128xf32>
    %4 = vector.multi_reduction <maximumf>, %3, %cst [0] : vector<16x128xf32> to vector<128xf32>
    %5 = vector.shape_cast %4 : vector<128xf32> to vector<1x128xf32>
    %6 = vector.broadcast %5 : vector<1x128xf32> to vector<16x128xf32>
    %7 = arith.subf %3, %6 : vector<16x128xf32>
    %8 = math.exp %7 : vector<16x128xf32>
    %cst_2 = arith.constant dense<0.000000e+00> : vector<128xf32>
    %9 = vector.multi_reduction <add>, %8, %cst_2 [0] : vector<16x128xf32> to vector<128xf32>
    %10 = vector.shape_cast %9 : vector<128xf32> to vector<1x128xf32>
    %11 = math.log %10 : vector<1x128xf32>
    %c0_3 = arith.constant 0 : index
    %c0_4 = arith.constant 0 : index
    %12 = vector.load %arg3[%c0_3, %c0_4] : memref<1x128xi32, #tpu.memory_space<vmem>>, vector<1x128xi32>
    %13 = tpu.iota {dimensions = array<i32: 0>} : vector<16x128xi32>
    %14 = vector.broadcast %12 : vector<1x128xi32> to vector<16x128xi32>
    %15 = arith.cmpi eq, %13, %14 : vector<16x128xi32>
    %cst_5 = arith.constant 0.000000e+00 : f32
    %16 = vector.broadcast %cst_5 : f32 to vector<16x128xf32>
    %17 = arith.select %15, %7, %16 : vector<16x128xi1>, vector<16x128xf32>
    %cst_6 = arith.constant dense<0.000000e+00> : vector<128xf32>
    %18 = vector.multi_reduction <add>, %17, %cst_6 [0] : vector<16x128xf32> to vector<128xf32>
    %19 = vector.shape_cast %18 : vector<128xf32> to vector<1x128xf32>
    %20 = arith.subf %19, %11 : vector<1x128xf32>
    %21 = math.exp %20 : vector<1x128xf32>
    %cst_7 = arith.constant 1.000000e+00 : f32
    %22 = vector.broadcast %cst_7 : f32 to vector<1x128xf32>
    %23 = arith.subf %22, %21 : vector<1x128xf32>
    %24 = arith.mulf %23, %23 : vector<1x128xf32>
    %cst_8 = arith.constant 0.000000e+00 : f32
    %25 = vector.broadcast %cst_8 : f32 to vector<1x128xf32>
    %26 = arith.subf %25, %24 : vector<1x128xf32>
    %27 = arith.mulf %26, %20 : vector<1x128xf32>
    %c1_i32 = arith.constant 1 : i32
    %28 = arith.muli %arg0, %c1_i32 : i32
    %29 = arith.addi %28, %arg1 : i32
    %c128_i32 = arith.constant 128 : i32
    %30 = arith.muli %29, %c128_i32 : i32
    %c128_i32_9 = arith.constant 128 : i32
    %31 = arith.addi %30, %c128_i32_9 : i32
    %c16_i32 = arith.constant 16 : i32
    %32 = arith.cmpi sgt, %31, %c16_i32 : i32
    %true = arith.constant true
    %33 = arith.xori %32, %true : i1
    %34 = arith.extui %33 : i1 to i32
    %c0_i32_10 = arith.constant 0 : i32
    %35 = arith.cmpi ne, %34, %c0_i32_10 : i32
    scf.if %35 {
      %c0_14 = arith.constant 0 : index
      %c0_15 = arith.constant 0 : index
      %41 = vector.load %arg5[%c0_14, %c0_15] : memref<1x128xf32, #tpu.memory_space<vmem>>, vector<1x128xf32>
      %42 = arith.addf %41, %27 : vector<1x128xf32>
      %c0_16 = arith.constant 0 : index
      %c0_17 = arith.constant 0 : index
      %43 = vector.load %arg5[%c0_16, %c0_17] : memref<1x128xf32, #tpu.memory_space<vmem>>, vector<1x128xf32>
      tpu.vector_store %arg5[%c0_16, %c0_17], %42 {strides = array<i32>} : memref<1x128xf32, #tpu.memory_space<vmem>>, vector<1x128xf32>,
    } else {
    }
    %36 = arith.extui %32 : i1 to i32
    %c0_i32_11 = arith.constant 0 : i32
    %37 = arith.cmpi ne, %36, %c0_i32_11 : i32
    scf.if %37 {
      %41 = tpu.iota {dimensions = array<i32: 1>} : vector<1x128xi32>
      %42 = vector.broadcast %30 : i32 to vector<1x128xi32>
      %43 = arith.addi %42, %41 : vector<1x128xi32>
      %c0_14 = arith.constant 0 : index
      %c0_15 = arith.constant 0 : index
      %44 = vector.load %arg5[%c0_14, %c0_15] : memref<1x128xf32, #tpu.memory_space<vmem>>, vector<1x128xf32>
      %c16_i32_16 = arith.constant 16 : i32
      %45 = vector.broadcast %c16_i32_16 : i32 to vector<1x128xi32>
      %46 = arith.cmpi slt, %43, %45 : vector<1x128xi32>
      %cst_17 = arith.constant 0.000000e+00 : f32
      %47 = vector.broadcast %cst_17 : f32 to vector<1x128xf32>
      %48 = arith.select %46, %27, %47 : vector<1x128xi1>, vector<1x128xf32>
      %49 = arith.addf %44, %48 : vector<1x128xf32>
      %c0_18 = arith.constant 0 : index
      %c0_19 = arith.constant 0 : index
      %50 = vector.load %arg5[%c0_18, %c0_19] : memref<1x128xf32, #tpu.memory_space<vmem>>, vector<1x128xf32>
      tpu.vector_store %arg5[%c0_18, %c0_19], %49 {strides = array<i32>} : memref<1x128xf32, #tpu.memory_space<vmem>>, vector<1x128xf32>,
    } else {
    }
    %c0_i32_12 = arith.constant 0 : i32
    %38 = arith.cmpi eq, %arg1, %c0_i32_12 : i32
    %39 = arith.extui %38 : i1 to i32
    %c0_i32_13 = arith.constant 0 : i32
    %40 = arith.cmpi ne, %39, %c0_i32_13 : i32
    scf.if %40 {
      %c0_14 = arith.constant 0 : index
      %c0_15 = arith.constant 0 : index
      %41 = vector.load %arg5[%c0_14, %c0_15] : memref<1x128xf32, #tpu.memory_space<vmem>>, vector<1x128xf32>
      %42 = vector.shape_cast %41 : vector<1x128xf32> to vector<1x1x128xf32>
      %cst_16 = arith.constant dense<0.000000e+00> : vector<1xf32>
      %43 = vector.multi_reduction <add>, %42, %cst_16 [1, 2] : vector<1x1x128xf32> to vector<1xf32>
      %44 = vector.shape_cast %43 : vector<1xf32> to vector<1x1x1xf32>
      %45 = vector.extract %44[0, 0, 0] : f32 from vector<1x1x1xf32>
      %46 = vector.broadcast %45 : f32 to vector<1x8x128xf32>
      %c0_17 = arith.constant 0 : index
      %c0_18 = arith.constant 0 : index
      %c0_19 = arith.constant 0 : index
      %47 = vector.load %arg4[%c0_17, %c0_18, %c0_19] : memref<1x8x128xf32, #tpu.memory_space<vmem>>, vector<1x8x128xf32>
      tpu.vector_store %arg4[%c0_17, %c0_18, %c0_19], %46 {strides = array<i32>} : memref<1x8x128xf32, #tpu.memory_space<vmem>>, vector<1x8x128xf32>,
    } else {
    }
    return
  }
  func.func @transform_0(%arg0: i32, %arg1: i32) -> (i32, i32) {
    %c1_i32 = arith.constant 1 : i32
    %0 = arith.muli %arg0, %c1_i32 : i32
    %1 = arith.addi %0, %arg1 : i32
    %c0_i32 = arith.constant 0 : i32
    %c0_i32_0 = arith.constant 0 : i32
    return %c0_i32, %1 : i32, i32
  }
  func.func @transform_1(%arg0: i32, %arg1: i32) -> (i32, i32) {
    %c1_i32 = arith.constant 1 : i32
    %0 = arith.muli %arg0, %c1_i32 : i32
    %1 = arith.addi %0, %arg1 : i32
    %c0_i32 = arith.constant 0 : i32
    %c0_i32_0 = arith.constant 0 : i32
    return %c0_i32, %1 : i32, i32
  }
  func.func @transform_2(%arg0: i32, %arg1: i32) -> (i32, i32, i32) {
    %c0_i32 = arith.constant 0 : i32
    %c0_i32_0 = arith.constant 0 : i32
    %c0_i32_1 = arith.constant 0 : i32
    return %arg0, %c0_i32, %c0_i32_0 : i32, i32, i32
  }
}

</mosaic_0001>

<bundles_post_ra>
// kernel: tpu_custom_call.1
= control target key start
LH: loop header
LB: loop body
LE: loop exit
PB: predicated region body
PF: predicated region fallthrough
CT: control target
= control target key end

     0   :  { %7 = vsyncpa [#allocation4], 0  ;;  %s246_s0 = inlined_call_operand.hbm [shape: f32[16,128], index: 0, kind: input, shape index: {}]   ;;  %s247_s1 = inlined_call_operand.vmem [shape: s32[1,128], index: 1, kind: input, shape index: {}]   ;;  %s248_s2 = inlined_call_operand.hbm [shape: f32[1,8,128], index: 2, kind: output, shape index: {}]  }
   0x1   :  { %8 = vsyncpa [#allocation5], 0  ;;  %s217_s9 = smov [#allocation3]  }
   0x2   :  { %s17_s10 = sshll.u32 %s217_s9, 4  ;;  %s18_s10 = int_to_ptr.vmem [resolvable:$true] %s17_s10 }
   0x3   :  { %s181_s11 = scalar_lea.vmem %s18_s10, 256  ;;  %p186_p1 = scmp.lt.s32.totalorder %s18_s10, %s18_s10 }
   0x4   :  { %p182_p0 = scmp.ne.s32.totalorder %s18_s10, %s181_s11  ;;  %p187_p2 = scmp.lt.s32.totalorder %s181_s11, %s181_s11 }
   0x6   :  { %p188_p3 = por %p187_p2, %p186_p1 }
   0x8   :  { %p189_p4 = pnand %p188_p3, %p182_p0 }
   0xa   :  { %192 = shalt.err (!%p189_p4)
}
   0xb   :  { %s218_s12 = smov 128   ;;  %s219_s13 = smov 8  }
   0xc   :  { %23 = dma.hbm_to_vmem [thread:$0]  %s246_s0, 256, %s18_s10, [#allocation4], %s218_s12, %s218_s12, %s219_s13  }
   0xd   :  { %213 = dma.done.wait [#allocation4], 256  }
   0xe   :  { %214 = vsyncadd [#allocation4], 4294967040  ;;  %v220_v0 = vmov 0.0   ;;  %v49_v1 = vld [vmem:[#allocation3] sm:$0xff]  ;;  %v50_v2 = vld [vmem:[#allocation3 + $0x8] sm:$0xff]  ;;  %v74_v14 = vlaneseq  ;;  %vm126_vm3 = vcmask 1040384  }
   0xf   :  { %48 = vst [vmem:[#allocation2] sm:$0x1] %v220_v0  ;;  %v51_v3 = vmax.f32 %v49_v1, %v50_v2  ;;  %v157_v17 = vld [vmem:[%s247_s1] ss:$0 sm:$0xff]  ;;  %s221_s1 = smov [#allocation6]  }
  0x10   :  { %v75_v15 = vshrl.u32 %v74_v14, 7  ;;  %v114_v42 = vand.u32 127, %v74_v14  ;;  %s145_s17 = sshll.u32 %s221_s1, 4  ;;  %s146_s17 = int_to_ptr.vmem [resolvable:$true] %s145_s17 }
  0x11   :  { %v52_v4 = vrot.slane %v51_v3, 4  ;;  %s193_s19 = scalar_lea.vmem %s146_s17, 128  ;;  %p198_p6 = scmp.lt.s32.totalorder %s146_s17, %s146_s17 }
  0x12   :  { %v76_v16 = vadd.s32 8, %v75_v15  ;;  %vm81_vm0 = vcmp.eq.s32.totalorder %v75_v15, %v157_v17  ;;  %vm118_vm2 = vcmp.lt.s32.totalorder %v114_v42, 16  ;;  %p194_p5 = scmp.ne.s32.totalorder %s146_s17, %s193_s19  ;;  %p199_p7 = scmp.lt.s32.totalorder %s193_s19, %s193_s19 }
  0x13   :  { %v53_v5 = vmax.f32 %v51_v3, %v52_v4 }
  0x14   :  { %vm82_vm1 = vcmp.eq.s32.totalorder %v76_v16, %v157_v17  ;;  %p200_p8 = por %p199_p7, %p198_p6 }
  0x15   :  { %v54_v6 = vrot.slane %v53_v5, 2 }
  0x16   :  { %v117_v46 = vld [vmem:[#allocation2] sm:$0x1]  ;;  %p201_p9 = pnand %p200_p8, %p194_p5 }
  0x17   :  { %v55_v7 = vmax.f32 %v53_v5, %v54_v6 }
  0x19   :  { %v56_v8 = vrot.slane %v55_v7, 1 }
  0x1b   :  { %v57_v9 = vmax.f32 %v55_v7, %v56_v8 }
  0x1d   :  { %v58_v10 = vsub.f32 %v49_v1, %v57_v9  ;;  %v59_v11 = vsub.f32 %v50_v2, %v57_v9 }
  0x1f   :  { %v60_v12 = vmul.f32 1.442695, %v58_v10  ;;  %v62_v13 = vmul.f32 1.442695, %v59_v11  ;;  %v83_v20 = vsel %vm81_vm0, %v58_v10, 0.0  ;;  %v84_v21 = vsel %vm82_vm1, %v59_v11, 0.0 }
  0x20   :  { %v85_v24 = vadd.f32 %v84_v21, %v83_v20 }
  0x21   :  { %165 = vpow2.f32 %v60_v12 }
  0x22   :  { %167 = vpow2.f32 %v62_v13  ;;  %v86_v27 = vrot.slane %v85_v24, 4 }
  0x24   :  { %v87_v30 = vadd.f32 %v86_v27, %v85_v24 }
  0x26   :  { %v88_v32 = vrot.slane %v87_v30, 2 }
  0x28   :  { %v89_v33 = vadd.f32 %v88_v32, %v87_v30 }
  0x2a   :  { %v90_v34 = vrot.slane %v89_v33, 1 }
  0x2c   :  { %v91_v35 = vadd.f32 %v90_v34, %v89_v33 }
  0x2e   :  { %v166_v18 = vpop.eup %165 }
  0x2f   :  { %v168_v19 = vpop.eup %167 }
  0x30   :  { %v64_v22 = vadd.f32 %v168_v19, %v166_v18 }
  0x32   :  { %v65_v23 = vrot.slane %v64_v22, 4 }
  0x34   :  { %v66_v25 = vadd.f32 %v65_v23, %v64_v22 }
  0x36   :  { %v67_v26 = vrot.slane %v66_v25, 2 }
  0x38   :  { %v68_v28 = vadd.f32 %v67_v26, %v66_v25 }
  0x3a   :  { %v69_v29 = vrot.slane %v68_v28, 1 }
  0x3c   :  { %v70_v31 = vadd.f32 %v69_v29, %v68_v28 }
  0x3e   :  { %169 = vlog2.f32 %v70_v31 }
  0x4b   :  { %v170_v36 = vpop.eup %169 }
  0x4c   :  { %v72_v37 = vmul.f32 0.6931472, %v170_v36 }
  0x4e   :  { %v92_v38 = vsub.f32 %v91_v35, %v72_v37 }
  0x50   :  { %v93_v39 = vmul.f32 1.442695, %v92_v38 }
  0x52   :  { %171 = vpow2.f32 %v93_v39 }
  0x5f   :  { %v172_v40 = vpop.eup %171 }
  0x60   :  { %v95_v41 = vsub.f32 1.0, %v172_v40 }
  0x62   :  { %v96_v43 = vmul.f32 %v95_v41, %v95_v41 }
  0x64   :  { %v97_v44 = vsub.f32 0.0, %v96_v43 }
  0x66   :  { %v98_v45 = vmul.f32 %v97_v44, %v92_v38 }
  0x68   :  { %v119_v47 = vsel %vm118_vm2, %v98_v45, 0.0 }
  0x69   :  { %v120_v48 = vadd.f32 %v119_v47, %v117_v46 }
  0x6b   :  { %121 = vst [vmem:[#allocation2] sm:$0x1] %v120_v48 }
  0x72   :  { %v125_v49 = vld [vmem:[#allocation2] sm:$0x1] }
  0x73   :  { %v127_v50 = vsel %vm126_vm3, %v125_v49, 0.0 }
  0x74   :  { %128 = vadd.xlane.f32.xlu0 %v127_v50 }
  0xfd   :  { %v129_v51 = vpop.xlane.xlu0 %128 }
  0xfe   :  { %v130_v52 = vrot.slane %v129_v51, 4 }
 0x100   :  { %v131_v53 = vadd.f32 %v130_v52, %v129_v51 }
 0x102   :  { %v132_v54 = vrot.slane %v131_v53, 2 }
 0x104   :  { %v133_v55 = vadd.f32 %v132_v54, %v131_v53 }
 0x106   :  { %v134_v56 = vrot.slane %v133_v55, 1 }
 0x108   :  { %v135_v57 = vadd.f32 %v134_v56, %v133_v55 }
 0x10a   :  { %158 = vpush %v135_v57 }
 0x13b   :  { %s159_s18 = spop %158 }
 0x13c   :  { %v137_v58 = vstv %s159_s18 }
 0x13d   :  { %138 = vst [vmem:[#allocation6] sm:$0xff] %v137_v58 }
 0x13e   :  { %204 = shalt.err (!%p201_p9)
}
 0x13f   :  { %148 = dma.vmem_to_hbm [thread:$0]  %s146_s17, 128, %s248_s2, [#allocation5]  }
 0x140   :  { %215 = dma.done.wait [#allocation5], 128  }
 0x141   :  { %216 = vsyncadd [#allocation5], 4294967168 }
 0x142   :  { %152 = vsyncpa [#allocation4], 1 }
 0x143   :  { %153 = vsyncpa [#allocation5], 1 }

</bundles_post_ra>
